<compile_context>
chip_gen: v7x
topology: tpu7x:2x2x1
jax: 0.10.0
libtpu: 0.0.40
codegen_flags: <defaults>
</compile_context>

<pallas_src>
import jax
import jax.numpy as jnp
from jax.experimental import pallas as pl
from jax.experimental.pallas import tpu as pltpu


_VMEM_LIMIT = 48 << 20   # explicit scoped-VMEM budget (<= v7x 64 MiB physical)


# --------------------------------------------------------------------------
# helpers
# --------------------------------------------------------------------------
def _round_up(x, m):
    return ((x + m - 1) // m) * m


def _pad2(a, rows, cols):
    return jnp.pad(a, ((0, rows - a.shape[0]), (0, cols - a.shape[1])))


def _pad_row(v, cols):
    # 1-D param -> zero-padded (1, cols) row (zeros in padded lanes!)
    return jnp.pad(v, (0, cols - v.shape[0])).reshape(1, cols)


def _choose_tiles(n):
    """Return None for the small-graph fast path, else (n_pad, tm, tk)."""
    if _round_up(n, 128) <= 512:
        return None
    n_pad = _round_up(n, 512)                 # row/col pad granularity: one 512 tile
    tm = 1024 if (n_pad % 1024 == 0 and n_pad >= 4096) else 512
    if n_pad % 2048 == 0:
        tk = 2048
    elif n_pad % 1024 == 0:
        tk = 1024
    else:
        tk = 512
    return n_pad, tm, tk


def _relu_layernorm(h, gamma, beta, f_real):
    """ReLU -> (eval) Dropout -> LayerNorm(eps=1e-5) over the real f_real lanes.

    h has zero in all padded lanes; gamma/beta are zero-padded so padded output
    lanes stay exactly zero. Two-pass variance with an explicit lane mask.
    """
    h = jnp.maximum(h, 0.0)
    inv_f = 1.0 / float(f_real)
    lane = jax.lax.broadcasted_iota(jnp.int32, h.shape, h.ndim - 1)
    mask = lane < f_real
    mean = jnp.sum(h, axis=-1, keepdims=True) * inv_f
    centered = jnp.where(mask, h - mean, 0.0)
    var = jnp.sum(centered * centered, axis=-1, keepdims=True) * inv_f   # biased (PyTorch LN)
    return centered * jax.lax.rsqrt(var + 1e-5) * gamma + beta


# --------------------------------------------------------------------------
# kernels
# --------------------------------------------------------------------------
def _make_layer1_kernel(f_mid, tk):
    """acc = sum_k A[i,k] @ X[k]  (f32 acc, bf16 operands, width F_in);
    epilogue: H2 = LN1(ReLU(acc @ W1 + b1)) @ W2   (layer-2 pre-transform fused)."""
    def kernel(a_ref, x_ref, w1_ref, b1_ref, g1_ref, bt1_ref, w2_ref,
               h2_ref, acc_ref):
        k = pl.program_id(1)

        @pl.when(k == 0)
        def _():
            acc_ref[...] = jnp.zeros_like(acc_ref)

        start = pl.multiple_of(k * tk, tk)
        acc_ref[...] += jnp.dot(a_ref[...], x_ref[pl.ds(start, tk), :],
                                preferred_element_type=jnp.float32)

        @pl.when(k == pl.num_programs(1) - 1)
        def _():
            h = jnp.dot(acc_ref[...].astype(jnp.bfloat16), w1_ref[...],
                        preferred_element_type=jnp.float32) + b1_ref[...]
            ln = _relu_layernorm(h, g1_ref[...], bt1_ref[...], f_mid)
            h2_ref[...] = jnp.dot(ln.astype(jnp.bfloat16), w2_ref[...],
                                  preferred_element_type=jnp.float32
                                  ).astype(h2_ref.dtype)

    return kernel


def _make_layer2_kernel(f_out, tk):
    """acc = sum_k A[i,k] @ H2[k]; epilogue: out = LN2(ReLU(acc + b2))."""
    def kernel(a_ref, h_ref, b_ref, g_ref, bt_ref, o_ref, acc_ref):
        k = pl.program_id(1)

        @pl.when(k == 0)
        def _():
            acc_ref[...] = jnp.zeros_like(acc_ref)

        start = pl.multiple_of(k * tk, tk)
        acc_ref[...] += jnp.dot(a_ref[...], h_ref[pl.ds(start, tk), :],
                                preferred_element_type=jnp.float32)

        @pl.when(k == pl.num_programs(1) - 1)
        def _():
            h = acc_ref[...] + b_ref[...]
            o_ref[...] = _relu_layernorm(h, g_ref[...], bt_ref[...], f_out)

    return kernel


def _make_fused_small_kernel(f_mid, f_out):
    """Small-graph fast path: both GCN layers in one grid-less kernel (VMEM-resident)."""
    def kernel(a_ref, x_ref, w1_ref, b1_ref, g1_ref, bt1_ref,
               w2_ref, b2_ref, g2_ref, bt2_ref, o_ref):
        a = a_ref[...]
        # layer 1: (A @ X) @ W1 + b1 -> ReLU -> Dropout(eval) -> LN1
        ax = jnp.dot(a, x_ref[...], preferred_element_type=jnp.float32)
        h1 = jnp.dot(ax.astype(jnp.bfloat16), w1_ref[...],
                     preferred_element_type=jnp.float32) + b1_ref[...]
        h1 = _relu_layernorm(h1, g1_ref[...], bt1_ref[...], f_mid)
        # layer 2: A @ (LN1 @ W2) + b2 -> ReLU -> Dropout(eval) -> LN2
        h2 = jnp.dot(h1.astype(jnp.bfloat16), w2_ref[...],
                     preferred_element_type=jnp.float32)
        agg = jnp.dot(a, h2.astype(jnp.bfloat16),
                      preferred_element_type=jnp.float32) + b2_ref[...]
        o_ref[...] = _relu_layernorm(agg, g2_ref[...], bt2_ref[...], f_out)

    return kernel


# --------------------------------------------------------------------------
# tiled pallas_call wrappers
# --------------------------------------------------------------------------
def _layer1_call(a_pad, x_pad, w1, b1, g1, bt1, w2, f_mid, tm, tk):
    n_pad = a_pad.shape[0]
    fi_pad = x_pad.shape[1]
    fm_pad = w1.shape[1]
    fo_pad = w2.shape[1]
    grid = (n_pad // tm, n_pad // tk)
    row = lambda c: pl.BlockSpec((1, c), lambda i, k: (0, 0))
    cost = pl.CostEstimate(
        flops=2 * n_pad * n_pad * fi_pad
              + 2 * n_pad * fi_pad * fm_pad
              + 2 * n_pad * fm_pad * fo_pad,
        transcendentals=n_pad,
        bytes_accessed=2 * (n_pad * n_pad + n_pad * fi_pad + n_pad * fo_pad),
    )
    return pl.pallas_call(
        _make_layer1_kernel(f_mid, tk),
        out_shape=jax.ShapeDtypeStruct((n_pad, fo_pad), jnp.bfloat16),
        grid_spec=pltpu.PrefetchScalarGridSpec(
            num_scalar_prefetch=0,
            grid=grid,
            in_specs=[
                pl.BlockSpec((tm, tk), lambda i, k: (i, k)),          # A_hat (bf16)
                pl.BlockSpec((n_pad, fi_pad), lambda i, k: (0, 0)),   # X resident (bf16)
                pl.BlockSpec((fi_pad, fm_pad), lambda i, k: (0, 0)),  # W1 (bf16, resident)
                row(fm_pad), row(fm_pad), row(fm_pad),                # b1, gamma1, beta1 (f32)
                pl.BlockSpec((fm_pad, fo_pad), lambda i, k: (0, 0)),  # W2 (bf16, resident)
            ],
            out_specs=pl.BlockSpec((tm, fo_pad), lambda i, k: (i, 0)),
            scratch_shapes=[pltpu.VMEM((tm, fi_pad), jnp.float32)],
        ),
        compiler_params=pltpu.CompilerParams(
            dimension_semantics=("parallel", "arbitrary"),
            vmem_limit_bytes=_VMEM_LIMIT),
        cost_estimate=cost,
    )(a_pad, x_pad, w1, b1, g1, bt1, w2)


def _layer2_call(a_pad, h2, b2, g2, bt2, f_out, tm, tk):
    n_pad = a_pad.shape[0]
    fo_pad = h2.shape[1]
    grid = (n_pad // tm, n_pad // tk)
    row = lambda c: pl.BlockSpec((1, c), lambda i, k: (0, 0))
    cost = pl.CostEstimate(
        flops=2 * n_pad * n_pad * fo_pad,
        transcendentals=n_pad,
        bytes_accessed=2 * n_pad * n_pad + 2 * n_pad * fo_pad + 4 * n_pad * fo_pad,
    )
    return pl.pallas_call(
        _make_layer2_kernel(f_out, tk),
        out_shape=jax.ShapeDtypeStruct((n_pad, fo_pad), jnp.float32),
        grid_spec=pltpu.PrefetchScalarGridSpec(
            num_scalar_prefetch=0,
            grid=grid,
            in_specs=[
                pl.BlockSpec((tm, tk), lambda i, k: (i, k)),          # A_hat (bf16)
                pl.BlockSpec((n_pad, fo_pad), lambda i, k: (0, 0)),   # H2 resident (bf16)
                row(fo_pad), row(fo_pad), row(fo_pad),                # b2, gamma2, beta2 (f32)
            ],
            out_specs=pl.BlockSpec((tm, fo_pad), lambda i, k: (i, 0)),
            scratch_shapes=[pltpu.VMEM((tm, fo_pad), jnp.float32)],
        ),
        compiler_params=pltpu.CompilerParams(
            dimension_semantics=("parallel", "arbitrary"),
            vmem_limit_bytes=_VMEM_LIMIT),
        cost_estimate=cost,
    )(a_pad, h2, b2, g2, bt2)


# --------------------------------------------------------------------------
# Plain-JAX glue: dense normalized adjacency from edge_index (PyG gcn_norm)
# --------------------------------------------------------------------------
def build_norm_adj(edge_index, num_nodes):
    src = edge_index[0]
    dst = edge_index[1]
    # add self loops
    loops = jnp.arange(num_nodes, dtype=edge_index.dtype)
    src = jnp.concatenate([src, loops])
    dst = jnp.concatenate([dst, loops])
    # A[dst, src] accumulates edge weights (message flows src -> dst)
    a = jnp.zeros((num_nodes, num_nodes), jnp.float32).at[dst, src].add(1.0)
    deg = jnp.sum(a, axis=1)
    dinv = jnp.where(deg > 0, 1.0 / jnp.sqrt(deg), 0.0)
    # A_hat[i, j] = dinv[i] * A[i, j] * dinv[j]
    return dinv[:, None] * a * dinv[None, :]


# --------------------------------------------------------------------------
# GNNLayer forward
# --------------------------------------------------------------------------
def gnn_layer(x, edge_index, params):
    n, hidden = x.shape
    f_mid = hidden * 2

    a_hat = build_norm_adj(edge_index, n)

    fi_pad = _round_up(hidden, 128)
    fm_pad = _round_up(f_mid, 128)
    fo_pad = _round_up(hidden, 128)

    # zero-padded params; weights in bf16 (MXU operands), LN/bias rows in f32
    w1 = _pad2(params["w1"], fi_pad, fm_pad).astype(jnp.bfloat16)
    b1 = _pad_row(params["b1"], fm_pad)
    g1 = _pad_row(params["gamma1"], fm_pad)
    bt1 = _pad_row(params["beta1"], fm_pad)
    w2 = _pad2(params["w2"], fm_pad, fo_pad).astype(jnp.bfloat16)
    b2 = _pad_row(params["b2"], fo_pad)
    g2 = _pad_row(params["gamma2"], fo_pad)
    bt2 = _pad_row(params["beta2"], fo_pad)

    tiles = _choose_tiles(n)

    if tiles is None:
        # -------- small-graph fast path: one fused kernel, no grid --------
        n_pad = max(_round_up(n, 128), 128)
        a_pad = _pad2(a_hat, n_pad, n_pad).astype(jnp.bfloat16)
        x_pad = _pad2(x, n_pad, fi_pad).astype(jnp.bfloat16)
        out = pl.pallas_call(
            _make_fused_small_kernel(f_mid, hidden),
            out_shape=jax.ShapeDtypeStruct((n_pad, fo_pad), jnp.float32),
        )(a_pad, x_pad, w1, b1, g1, bt1, w2, b2, g2, bt2)
        return out[:n, :hidden]

    # -------- tiled path --------
    n_pad, tm, tk = tiles
    a_pad = _pad2(a_hat, n_pad, n_pad).astype(jnp.bfloat16)
    x_pad = _pad2(x, n_pad, fi_pad).astype(jnp.bfloat16)

    # layer 1 (F_in < F_out): aggregate-then-transform, with layer-2's
    # pre-transform (@ W2) fused into the epilogue -> H2 in bf16
    h2 = _layer1_call(a_pad, x_pad, w1, b1, g1, bt1, w2, f_mid, tm, tk)
    # layer 2 (F_in > F_out): aggregate the pre-transformed H2 at width hidden
    out = _layer2_call(a_pad, h2, b2, g2, bt2, hidden, tm, tk)
    return out[:n, :hidden]


def init_params(key, hidden_dim):
    h2 = hidden_dim * 2

    def glorot(k, fan_in, fan_out):
        lim = (6.0 / (fan_in + fan_out)) ** 0.5
        return jax.random.uniform(k, (fan_in, fan_out), jnp.float32, -lim, lim)

    k1, k2 = jax.random.split(key)
    return {
        # GCNConv(hidden_dim -> hidden_dim*2): glorot weight, zero bias
        "w1": glorot(k1, hidden_dim, h2),
        "b1": jnp.zeros((h2,), jnp.float32),
        # LayerNorm(hidden_dim*2): weight=1, bias=0 (PyTorch default init)
        "gamma1": jnp.ones((h2,), jnp.float32),
        "beta1": jnp.zeros((h2,), jnp.float32),
        # GCNConv(hidden_dim*2 -> hidden_dim)
        "w2": glorot(k2, h2, hidden_dim),
        "b2": jnp.zeros((hidden_dim,), jnp.float32),
        # LayerNorm(hidden_dim)
        "gamma2": jnp.ones((hidden_dim,), jnp.float32),
        "beta2": jnp.zeros((hidden_dim,), jnp.float32),
    }


def _ring_edges(n):
    idx = jnp.arange(n, dtype=jnp.int32)
    src = jnp.concatenate([idx, (idx + 1) % n])
    dst = jnp.concatenate([(idx + 1) % n, idx])
    return jnp.stack([src, dst]).astype(jnp.int32)


if __name__ == "__main__":
    key = jax.random.PRNGKey(0)
    kx, kp, kx2 = jax.random.split(key, 3)

    N, HIDDEN = 16, 32          # 16 graph nodes, hidden_dim = 32
    DROP_PROB = 0.1             # unused at inference (dropout = identity)

    params = init_params(kp, HIDDEN)
    fwd = jax.jit(gnn_layer)

    # --- small-graph fast path (single fused kernel) ---
    x = jax.random.normal(kx, (N, HIDDEN), jnp.float32)
    edge_index = _ring_edges(N)
    out = fwd(x, edge_index, params)
    jax.block_until_ready(out)
    assert out.shape == (N, HIDDEN) and out.dtype == jnp.float32
    assert bool(jnp.all(jnp.isfinite(out)))

    # --- tiled path (grid over row tiles x contraction tiles) ---
    N2 = 600
    x2 = jax.random.normal(kx2, (N2, HIDDEN), jnp.float32)
    edge_index2 = _ring_edges(N2)
    out2 = fwd(x2, edge_index2, params)
    jax.block_until_ready(out2)
    assert out2.shape == (N2, HIDDEN) and out2.dtype == jnp.float32
    assert bool(jnp.all(jnp.isfinite(out2)))

    print("KERNEL_OK")
</pallas_src>

<mosaic_0001>
module attributes {stable_mosaic.version = 11 : i64} {
  func.func private @main(%arg0: i32) attributes {dimension_semantics = [#tpu.dimension_semantics<core_parallel>], iteration_bounds = array<i64: 2>, tpu.core_type = #tpu.core_type<sc_scalar_subcore>, window_params = []} {
    return
  }
}

module attributes {stable_mosaic.version = 11 : i64} {
  func.func private @main(%arg0: i32) attributes {dimension_semantics = [#tpu.dimension_semantics<core_parallel>], iteration_bounds = array<i64: 2>, tpu.core_type = #tpu.core_type<sc_scalar_subcore>, window_params = []} {
    return
  }
}

module attributes {stable_mosaic.version = 11 : i64} {
  func.func @kernel(%arg0: memref<128x128xbf16, #tpu.memory_space<vmem>>, %arg1: memref<128x128xbf16, #tpu.memory_space<vmem>>, %arg2: memref<128x128xbf16, #tpu.memory_space<vmem>>, %arg3: memref<1x128xf32, #tpu.memory_space<vmem>>, %arg4: memref<1x128xf32, #tpu.memory_space<vmem>>, %arg5: memref<1x128xf32, #tpu.memory_space<vmem>>, %arg6: memref<128x128xbf16, #tpu.memory_space<vmem>>, %arg7: memref<1x128xf32, #tpu.memory_space<vmem>>, %arg8: memref<1x128xf32, #tpu.memory_space<vmem>>, %arg9: memref<1x128xf32, #tpu.memory_space<vmem>>, %arg10: memref<128x128xf32, #tpu.memory_space<vmem>>) attributes {dimension_semantics = [], scalar_prefetch = 0 : i64, scratch_operands = 0 : i64, tpu.core_type = #tpu.core_type<tc>} {
    %c0 = arith.constant 0 : index
    %c0_0 = arith.constant 0 : index
    %0 = vector.load %arg0[%c0, %c0_0] : memref<128x128xbf16, #tpu.memory_space<vmem>>, vector<128x128xbf16>
    %c0_1 = arith.constant 0 : index
    %c0_2 = arith.constant 0 : index
    %1 = vector.load %arg1[%c0_1, %c0_2] : memref<128x128xbf16, #tpu.memory_space<vmem>>, vector<128x128xbf16>
    %cst = arith.constant dense<0.000000e+00> : vector<128x128xf32>
    %2 = tpu.matmul %0, %1, %cst {dimension_numbers = #tpu.dot_dimension_numbers<[1], [0], [0], [1], [0, 0, 1, 1], [], []>} : vector<128x128xbf16>, vector<128x128xbf16>, vector<128x128xf32> -> vector<128x128xf32>
    %3 = arith.truncf %2 : vector<128x128xf32> to vector<128x128xbf16>
    %c0_3 = arith.constant 0 : index
    %c0_4 = arith.constant 0 : index
    %4 = vector.load %arg2[%c0_3, %c0_4] : memref<128x128xbf16, #tpu.memory_space<vmem>>, vector<128x128xbf16>
    %cst_5 = arith.constant dense<0.000000e+00> : vector<128x128xf32>
    %5 = tpu.matmul %3, %4, %cst_5 {dimension_numbers = #tpu.dot_dimension_numbers<[1], [0], [0], [1], [0, 0, 1, 1], [], []>} : vector<128x128xbf16>, vector<128x128xbf16>, vector<128x128xf32> -> vector<128x128xf32>
    %c0_6 = arith.constant 0 : index
    %c0_7 = arith.constant 0 : index
    %6 = vector.load %arg3[%c0_6, %c0_7] : memref<1x128xf32, #tpu.memory_space<vmem>>, vector<1x128xf32>
    %7 = vector.broadcast %6 : vector<1x128xf32> to vector<128x128xf32>
    %8 = arith.addf %5, %7 : vector<128x128xf32>
    %c0_8 = arith.constant 0 : index
    %c0_9 = arith.constant 0 : index
    %9 = vector.load %arg4[%c0_8, %c0_9] : memref<1x128xf32, #tpu.memory_space<vmem>>, vector<1x128xf32>
    %c0_10 = arith.constant 0 : index
    %c0_11 = arith.constant 0 : index
    %10 = vector.load %arg5[%c0_10, %c0_11] : memref<1x128xf32, #tpu.memory_space<vmem>>, vector<1x128xf32>
    %cst_12 = arith.constant 0.000000e+00 : f32
    %11 = vector.broadcast %cst_12 : f32 to vector<128x128xf32>
    %12 = arith.maximumf %8, %11 : vector<128x128xf32>
    %13 = tpu.iota {dimensions = array<i32: 1>} : vector<128x128xi32>
    %c64_i32 = arith.constant 64 : i32
    %14 = vector.broadcast %c64_i32 : i32 to vector<128x128xi32>
    %15 = arith.cmpi slt, %13, %14 : vector<128x128xi32>
    %cst_13 = arith.constant dense<0.000000e+00> : vector<128xf32>
    %16 = vector.multi_reduction <add>, %12, %cst_13 [1] : vector<128x128xf32> to vector<128xf32>
    %17 = vector.shape_cast %16 : vector<128xf32> to vector<128x1xf32>
    %cst_14 = arith.constant 1.562500e-02 : f32
    %18 = vector.broadcast %cst_14 : f32 to vector<128x1xf32>
    %19 = arith.mulf %17, %18 : vector<128x1xf32>
    %20 = vector.broadcast %19 : vector<128x1xf32> to vector<128x128xf32>
    %21 = arith.subf %12, %20 : vector<128x128xf32>
    %cst_15 = arith.constant 0.000000e+00 : f32
    %22 = vector.broadcast %cst_15 : f32 to vector<128x128xf32>
    %23 = arith.select %15, %21, %22 : vector<128x128xi1>, vector<128x128xf32>
    %24 = arith.mulf %23, %23 : vector<128x128xf32>
    %cst_16 = arith.constant dense<0.000000e+00> : vector<128xf32>
    %25 = vector.multi_reduction <add>, %24, %cst_16 [1] : vector<128x128xf32> to vector<128xf32>
    %26 = vector.shape_cast %25 : vector<128xf32> to vector<128x1xf32>
    %cst_17 = arith.constant 1.562500e-02 : f32
    %27 = vector.broadcast %cst_17 : f32 to vector<128x1xf32>
    %28 = arith.mulf %26, %27 : vector<128x1xf32>
    %cst_18 = arith.constant 9.99999974E-6 : f32
    %29 = vector.broadcast %cst_18 : f32 to vector<128x1xf32>
    %30 = arith.addf %28, %29 : vector<128x1xf32>
    %31 = math.rsqrt %30 : vector<128x1xf32>
    %32 = vector.broadcast %31 : vector<128x1xf32> to vector<128x128xf32>
    %33 = arith.mulf %23, %32 : vector<128x128xf32>
    %34 = vector.broadcast %9 : vector<1x128xf32> to vector<128x128xf32>
    %35 = arith.mulf %33, %34 : vector<128x128xf32>
    %36 = vector.broadcast %10 : vector<1x128xf32> to vector<128x128xf32>
    %37 = arith.addf %35, %36 : vector<128x128xf32>
    %38 = arith.truncf %37 : vector<128x128xf32> to vector<128x128xbf16>
    %c0_19 = arith.constant 0 : index
    %c0_20 = arith.constant 0 : index
    %39 = vector.load %arg6[%c0_19, %c0_20] : memref<128x128xbf16, #tpu.memory_space<vmem>>, vector<128x128xbf16>
    %cst_21 = arith.constant dense<0.000000e+00> : vector<128x128xf32>
    %40 = tpu.matmul %38, %39, %cst_21 {dimension_numbers = #tpu.dot_dimension_numbers<[1], [0], [0], [1], [0, 0, 1, 1], [], []>} : vector<128x128xbf16>, vector<128x128xbf16>, vector<128x128xf32> -> vector<128x128xf32>
    %41 = arith.truncf %40 : vector<128x128xf32> to vector<128x128xbf16>
    %cst_22 = arith.constant dense<0.000000e+00> : vector<128x128xf32>
    %42 = tpu.matmul %0, %41, %cst_22 {dimension_numbers = #tpu.dot_dimension_numbers<[1], [0], [0], [1], [0, 0, 1, 1], [], []>} : vector<128x128xbf16>, vector<128x128xbf16>, vector<128x128xf32> -> vector<128x128xf32>
    %c0_23 = arith.constant 0 : index
    %c0_24 = arith.constant 0 : index
    %43 = vector.load %arg7[%c0_23, %c0_24] : memref<1x128xf32, #tpu.memory_space<vmem>>, vector<1x128xf32>
    %44 = vector.broadcast %43 : vector<1x128xf32> to vector<128x128xf32>
    %45 = arith.addf %42, %44 : vector<128x128xf32>
    %c0_25 = arith.constant 0 : index
    %c0_26 = arith.constant 0 : index
    %46 = vector.load %arg8[%c0_25, %c0_26] : memref<1x128xf32, #tpu.memory_space<vmem>>, vector<1x128xf32>
    %c0_27 = arith.constant 0 : index
    %c0_28 = arith.constant 0 : index
    %47 = vector.load %arg9[%c0_27, %c0_28] : memref<1x128xf32, #tpu.memory_space<vmem>>, vector<1x128xf32>
    %cst_29 = arith.constant 0.000000e+00 : f32
    %48 = vector.broadcast %cst_29 : f32 to vector<128x128xf32>
    %49 = arith.maximumf %45, %48 : vector<128x128xf32>
    %50 = tpu.iota {dimensions = array<i32: 1>} : vector<128x128xi32>
    %c32_i32 = arith.constant 32 : i32
    %51 = vector.broadcast %c32_i32 : i32 to vector<128x128xi32>
    %52 = arith.cmpi slt, %50, %51 : vector<128x128xi32>
    %cst_30 = arith.constant dense<0.000000e+00> : vector<128xf32>
    %53 = vector.multi_reduction <add>, %49, %cst_30 [1] : vector<128x128xf32> to vector<128xf32>
    %54 = vector.shape_cast %53 : vector<128xf32> to vector<128x1xf32>
    %cst_31 = arith.constant 3.125000e-02 : f32
    %55 = vector.broadcast %cst_31 : f32 to vector<128x1xf32>
    %56 = arith.mulf %54, %55 : vector<128x1xf32>
    %57 = vector.broadcast %56 : vector<128x1xf32> to vector<128x128xf32>
    %58 = arith.subf %49, %57 : vector<128x128xf32>
    %cst_32 = arith.constant 0.000000e+00 : f32
    %59 = vector.broadcast %cst_32 : f32 to vector<128x128xf32>
    %60 = arith.select %52, %58, %59 : vector<128x128xi1>, vector<128x128xf32>
    %61 = arith.mulf %60, %60 : vector<128x128xf32>
    %cst_33 = arith.constant dense<0.000000e+00> : vector<128xf32>
    %62 = vector.multi_reduction <add>, %61, %cst_33 [1] : vector<128x128xf32> to vector<128xf32>
    %63 = vector.shape_cast %62 : vector<128xf32> to vector<128x1xf32>
    %cst_34 = arith.constant 3.125000e-02 : f32
    %64 = vector.broadcast %cst_34 : f32 to vector<128x1xf32>
    %65 = arith.mulf %63, %64 : vector<128x1xf32>
    %cst_35 = arith.constant 9.99999974E-6 : f32
    %66 = vector.broadcast %cst_35 : f32 to vector<128x1xf32>
    %67 = arith.addf %65, %66 : vector<128x1xf32>
    %68 = math.rsqrt %67 : vector<128x1xf32>
    %69 = vector.broadcast %68 : vector<128x1xf32> to vector<128x128xf32>
    %70 = arith.mulf %60, %69 : vector<128x128xf32>
    %71 = vector.broadcast %46 : vector<1x128xf32> to vector<128x128xf32>
    %72 = arith.mulf %70, %71 : vector<128x128xf32>
    %73 = vector.broadcast %47 : vector<1x128xf32> to vector<128x128xf32>
    %74 = arith.addf %72, %73 : vector<128x128xf32>
    %c0_36 = arith.constant 0 : index
    %c0_37 = arith.constant 0 : index
    %75 = vector.load %arg10[%c0_36, %c0_37] : memref<128x128xf32, #tpu.memory_space<vmem>>, vector<128x128xf32>
    tpu.vector_store %arg10[%c0_36, %c0_37], %74 {strides = array<i32>} : memref<128x128xf32, #tpu.memory_space<vmem>>, vector<128x128xf32>,
    return
  }
}

</mosaic_0001>

<bundles_post_ra>
// kernel: gnn_layer.1
= control target key start
LH: loop header
LB: loop body
LE: loop exit
PB: predicated region body
PF: predicated region fallthrough
CT: control target
= control target key end

     0   :  { %s2349_s1 = inlined_call_operand.vmem [shape: bf16[128,128], index: 1, kind: input, shape index: {}]   ;;  %s2350_s0 = inlined_call_operand.vmem [shape: bf16[128,128], index: 0, kind: input, shape index: {}]   ;;  %s2351_s2 = inlined_call_operand.vmem [shape: bf16[128,128], index: 2, kind: input, shape index: {}]   ;;  %s2352_s3 = inlined_call_operand.vmem [shape: f32[1,128], index: 3, kind: input, shape index: {}]   ;;  %s2353_s6 = inlined_call_operand.vmem [shape: bf16[128,128], index: 6, kind: input, shape index: {}]   ;;  %s2354_s4 = inlined_call_operand.vmem [shape: f32[1,128], index: 4, kind: input, shape index: {}]   ;;  %s2355_s5 = inlined_call_operand.vmem [shape: f32[1,128], index: 5, kind: input, shape index: {}]   ;;  %s2356_s7 = inlined_call_operand.vmem [shape: f32[1,128], index: 7, kind: input, shape index: {}]   ;;  %s2357_s8 = inlined_call_operand.vmem [shape: f32[1,128], index: 8, kind: input, shape index: {}]   ;;  %s2358_s9 = inlined_call_operand.vmem [shape: f32[1,128], index: 9, kind: input, shape index: {}]   ;;  %s2359_s10 = inlined_call_operand.vmem [shape: f32[128,128], index: 10, kind: output, shape index: {}]  }
   0x1   :  { %v1480_v0 = vld [vmem:[%s2349_s1] sm:$0xff]   ;;  %v1481_v1 = vld [vmem:[%s2349_s1 + $0x8] sm:$0xff]   ;;  %v1482_v2 = vld [vmem:[%s2349_s1 + $0x10] sm:$0xff]  }
   0x2   :  { %1352 = vmatprep.subr.bf16.mxu0 %v1480_v0  ;;  %v1483_v3 = vld [vmem:[%s2349_s1 + $0x18] sm:$0xff]   ;;  %v1646_v4 = vld [vmem:[%s2350_s0] sm:$0xff]   ;;  %v1485_v6 = vld [vmem:[%s2349_s1 + $0x28] sm:$0xff]  }
   0x3   :  { %1353 = vmatpush3.bf16.msra.mxu0 %v1480_v0  ;;  %1368 = vmatprep.mubr.bf16.mxu0 %v1646_v4  ;;  %v1484_v5 = vld [vmem:[%s2349_s1 + $0x20] sm:$0xff]   ;;  %v1497_v8 = vld [vmem:[%s2351_s2 + $0x8] sm:$0xff]   ;;  %v1486_v9 = vld [vmem:[%s2349_s1 + $0x30] sm:$0xff]  }
   0x4   :  { %1354 = vmatprep.subr.bf16.mxu0 %v1481_v1  ;;  %v1496_v7 = vld [vmem:[%s2351_s2] sm:$0xff]   ;;  %v1498_v10 = vld [vmem:[%s2351_s2 + $0x10] sm:$0xff]   ;;  %v1487_v11 = vld [vmem:[%s2349_s1 + $0x38] sm:$0xff]  }
   0x5   :  { %1384 = vmatprep.subr.bf16.mxu1 %v1496_v7  ;;  %v1499_v12 = vld [vmem:[%s2351_s2 + $0x18] sm:$0xff]   ;;  %v1500_v13 = vld [vmem:[%s2351_s2 + $0x20] sm:$0xff]   ;;  %v1679_v14 = vld [vmem:[%s2350_s0 + $0x8] sm:$0xff]  }
   0x6   :  { %1385 = vmatpush3.bf16.msra.mxu1 %v1496_v7  ;;  %v1684_v15 = vld [vmem:[%s2350_s0 + $0x10] sm:$0xff]   ;;  %v1501_v16 = vld [vmem:[%s2351_s2 + $0x28] sm:$0xff]   ;;  %v1697_v18 = vld [vmem:[%s2350_s0 + $0x18] sm:$0xff]  }
   0x7   :  { %1355 = vmatpush3.bf16.msra.mxu0 %v1481_v1  ;;  %1386 = vmatprep.subr.bf16.mxu1 %v1497_v8  ;;  %v1502_v17 = vld [vmem:[%s2351_s2 + $0x30] sm:$0xff]   ;;  %v1702_v19 = vld [vmem:[%s2350_s0 + $0x20] sm:$0xff]   ;;  %v1709_v20 = vld [vmem:[%s2350_s0 + $0x28] sm:$0xff]  }
   0x8   :  { %1356 = vmatprep.subr.bf16.mxu0 %v1482_v2  ;;  %v1714_v21 = vld [vmem:[%s2350_s0 + $0x30] sm:$0xff]   ;;  %v1721_v22 = vld [vmem:[%s2350_s0 + $0x38] sm:$0xff]   ;;  %v1266_v48 = vld [vmem:[%s2352_s3] ss:$0 sm:$0xff] }
   0x9   :  { %v1503_v23 = vld [vmem:[%s2351_s2 + $0x38] sm:$0xff]  }
   0xa   :  { %1387 = vmatpush3.bf16.msra.mxu1 %v1497_v8 }
   0xb   :  { %1357 = vmatpush3.bf16.msra.mxu0 %v1482_v2  ;;  %1388 = vmatprep.subr.bf16.mxu1 %v1498_v10 }
   0xc   :  { %1358 = vmatprep.subr.bf16.mxu0 %v1483_v3 }
   0xe   :  { %1389 = vmatpush3.bf16.msra.mxu1 %v1498_v10 }
   0xf   :  { %1359 = vmatpush3.bf16.msra.mxu0 %v1483_v3  ;;  %1390 = vmatprep.subr.bf16.mxu1 %v1499_v12 }
  0x10   :  { %1360 = vmatprep.subr.bf16.mxu0 %v1484_v5 }
  0x12   :  { %1391 = vmatpush3.bf16.msra.mxu1 %v1499_v12 }
  0x13   :  { %1361 = vmatpush3.bf16.msra.mxu0 %v1484_v5  ;;  %1392 = vmatprep.subr.bf16.mxu1 %v1500_v13 }
  0x14   :  { %1362 = vmatprep.subr.bf16.mxu0 %v1485_v6 }
  0x16   :  { %1393 = vmatpush3.bf16.msra.mxu1 %v1500_v13 }
  0x17   :  { %1363 = vmatpush3.bf16.msra.mxu0 %v1485_v6  ;;  %1394 = vmatprep.subr.bf16.mxu1 %v1501_v16 }
  0x18   :  { %1364 = vmatprep.subr.bf16.mxu0 %v1486_v9 }
  0x1a   :  { %1395 = vmatpush3.bf16.msra.mxu1 %v1501_v16 }
  0x1b   :  { %1365 = vmatpush3.bf16.msra.mxu0 %v1486_v9  ;;  %1396 = vmatprep.subr.bf16.mxu1 %v1502_v17 }
  0x1c   :  { %1366 = vmatprep.subr.bf16.mxu0 %v1487_v11 }
  0x1e   :  { %1397 = vmatpush3.bf16.msra.mxu1 %v1502_v17 }
  0x1f   :  { %1367 = vmatpush3.bf16.msra.mxu0 %v1487_v11  ;;  %1398 = vmatprep.subr.bf16.mxu1 %v1503_v23 }
  0x22   :  { %1369 = vmatmul.mubr.bf16.vlgmr.msra.gmra.mrb[0].mxu0 %v1679_v14  ;;  %1399 = vmatpush3.bf16.msra.mxu1 %v1503_v23 }
  0x23   :  { %1372 = vmatprep.mubr.bf16.mxu0 %v1684_v15 }
  0x2a   :  { %1373 = vmatmul.mubr.bf16.gmra.mrb[4].mxu0 %v1697_v18 }
  0x2b   :  { %1376 = vmatprep.mubr.bf16.mxu0 %v1702_v19 }
  0x32   :  { %1377 = vmatmul.mubr.bf16.gmra.mrb[8].mxu0 %v1709_v20 }
  0x33   :  { %1380 = vmatprep.mubr.bf16.mxu0 %v1714_v21 }
  0x3a   :  { %1381 = vmatmul.mubr.bf16.gmra.mrb[12].mxu0 %v1721_v22 }
  0xf5   :  { %v1370_v24 = vpop.f32.mrb[0].mxu0 }
  0xf6   :  { %v198_v25 = vpop.f32.mrb[1].mxu0 }
  0xf7   :  { %v1371_v26 = vpop.f32.mrb[2].mxu0 }
  0xf8   :  { %v262_v27 = vpack.c.bf16 %v1371_v26, %v1370_v24  ;;  %v201_v28 = vpop.f32.mrb[3].mxu0 }
  0xf9   :  { %v261_v29 = vpack.c.bf16 %v201_v28, %v198_v25 }
  0xfb   :  { %1400 = vmatprep.mubr.bf16.mxu1 %v261_v29 }
  0xfc   :  { %1401 = vmatmul.mubr.bf16.vlgmr.msra.gmra.mrb[0].mxu1 %v262_v27 }
  0xfd   :  { %v1374_v30 = vpop.f32.mrb[4].mxu0 }
  0xfe   :  { %v214_v31 = vpop.f32.mrb[5].mxu0 }
  0xff   :  { %v1375_v32 = vpop.f32.mrb[6].mxu0 }
 0x100   :  { %v264_v33 = vpack.c.bf16 %v1375_v32, %v1374_v30  ;;  %v217_v34 = vpop.f32.mrb[7].mxu0 }
 0x101   :  { %v263_v35 = vpack.c.bf16 %v217_v34, %v214_v31 }
 0x103   :  { %1404 = vmatprep.mubr.bf16.mxu1 %v263_v35 }
 0x104   :  { %1405 = vmatmul.mubr.bf16.gmra.mrb[4].mxu1 %v264_v33 }
 0x105   :  { %v1378_v36 = vpop.f32.mrb[8].mxu0 }
 0x106   :  { %v230_v37 = vpop.f32.mrb[9].mxu0 }
 0x107   :  { %v1379_v38 = vpop.f32.mrb[10].mxu0 }
 0x108   :  { %v266_v39 = vpack.c.bf16 %v1379_v38, %v1378_v36  ;;  %v233_v40 = vpop.f32.mrb[11].mxu0 }
 0x109   :  { %v265_v41 = vpack.c.bf16 %v233_v40, %v230_v37  ;;  %v1504_v40 = vld [vmem:[%s2353_s6] sm:$0xff]  }
 0x10a   :  { %1416 = vmatprep.subr.bf16.mxu0 %v1504_v40 }
 0x10b   :  { %1408 = vmatprep.mubr.bf16.mxu1 %v265_v41  ;;  %1417 = vmatpush3.bf16.msra.mxu0 %v1504_v40  ;;  %v455_v41 = vlaneseq }
 0x10c   :  { %1409 = vmatmul.mubr.bf16.gmra.mrb[8].mxu1 %v266_v39 }
 0x10d   :  { %v1382_v42 = vpop.f32.mrb[12].mxu0 }
 0x10e   :  { %v246_v43 = vpop.f32.mrb[13].mxu0 }
 0x10f   :  { %v1383_v44 = vpop.f32.mrb[14].mxu0 }
 0x110   :  { %v268_v45 = vpack.c.bf16 %v1383_v44, %v1382_v42  ;;  %v249_v46 = vpop.f32.mrb[15].mxu0  ;;  %v1814_v42 = vand.u32 127, %v455_v41 }
 0x111   :  { %v267_v47 = vpack.c.bf16 %v249_v46, %v246_v43 }
 0x112   :  { %vm457_vm0 = vcmp.lt.s32.totalorder %v1814_v42, 64  ;;  %vm993_vm1 = vcmp.lt.s32.totalorder %v1814_v42, 32 }
 0x113   :  { %1412 = vmatprep.mubr.bf16.mxu1 %v267_v47 }
 0x114   :  { %1413 = vmatmul.mubr.bf16.gmra.mrb[12].mxu1 %v268_v45 }
 0x115   :  { %1464 = vmatprep.mubr.bf16.mxu1 %v1646_v4 }
 0x1cf   :  { %v1402_v49 = vpop.f32.mrb[0].mxu1 }
 0x1d0   :  { %v1731_v50 = vadd.f32 %v1402_v49, %v1266_v48  ;;  %v374_v51 = vpop.f32.mrb[1].mxu1 }
 0x1d1   :  { %v1733_v52 = vadd.f32 %v1266_v48, %v374_v51  ;;  %v1403_v53 = vpop.f32.mrb[2].mxu1 }
 0x1d2   :  { %v441_v54 = vmax.f32 %v1731_v50, 0.0  ;;  %v1736_v55 = vadd.f32 %v1403_v53, %v1266_v48  ;;  %v377_v56 = vpop.f32.mrb[3].mxu1 }
 0x1d3   :  { %v439_v57 = vmax.f32 %v1733_v52, 0.0  ;;  %v1739_v58 = vadd.f32 %v1266_v48, %v377_v56 }
 0x1d4   :  { %462 = vadd.xlane.f32.xlu1 %v441_v54  ;;  %v442_v59 = vmax.f32 %v1736_v55, 0.0 }
 0x1d5   :  { %458 = vadd.xlane.f32.xlu0 %v439_v57  ;;  %v440_v60 = vmax.f32 %v1739_v58, 0.0 }
 0x1d7   :  { %v1406_v61 = vpop.f32.mrb[4].mxu1 }
 0x1d8   :  { %464 = vadd.xlane.f32.xlu1 %v442_v59  ;;  %v390_v62 = vpop.f32.mrb[5].mxu1  ;;  %v1753_v2 = vadd.f32 %v1406_v61, %v1266_v48 }
 0x1d9   :  { %v1749_v63 = vadd.f32 %v1266_v48, %v390_v62  ;;  %460 = vadd.xlane.f32.xlu0 %v440_v60  ;;  %v1407_v0 = vpop.f32.mrb[6].mxu1 }
 0x1da   :  { %v393_v1 = vpop.f32.mrb[7].mxu1  ;;  %v1758_v5 = vadd.f32 %v1407_v0, %v1266_v48  ;;  %v445_v7 = vmax.f32 %v1753_v2, 0.0 }
 0x1db   :  { %v443_v3 = vmax.f32 %v1749_v63, 0.0  ;;  %v1756_v4 = vadd.f32 %v1266_v48, %v393_v1 }
 0x1dc   :  { %v446_v10 = vmax.f32 %v1758_v5, 0.0 }
 0x1dd   :  { %v444_v6 = vmax.f32 %v1756_v4, 0.0  ;;  %466 = vadd.xlane.f32.xlu0 %v443_v3 }
 0x1df   :  { %468 = vadd.xlane.f32.xlu1 %v444_v6  ;;  %v1410_v8 = vpop.f32.mrb[8].mxu1 }
 0x1e0   :  { %v406_v9 = vpop.f32.mrb[9].mxu1  ;;  %v1771_v16 = vadd.f32 %v1410_v8, %v1266_v48 }
 0x1e1   :  { %v1767_v11 = vadd.f32 %v1266_v48, %v406_v9  ;;  %470 = vadd.xlane.f32.xlu0 %v445_v7  ;;  %v1411_v12 = vpop.f32.mrb[10].mxu1 }
 0x1e2   :  { %v409_v13 = vpop.f32.mrb[11].mxu1  ;;  %v1778_v24 = vadd.f32 %v1411_v12, %v1266_v48  ;;  %v449_v26 = vmax.f32 %v1771_v16, 0.0 }
 0x1e3   :  { %v447_v17 = vmax.f32 %v1767_v11, 0.0  ;;  %v1774_v23 = vadd.f32 %v1266_v48, %v409_v13  ;;  %472 = vadd.xlane.f32.xlu1 %v446_v10 }
 0x1e4   :  { %v450_v29 = vmax.f32 %v1778_v24, 0.0 }
 0x1e5   :  { %v448_v25 = vmax.f32 %v1774_v23, 0.0  ;;  %474 = vadd.xlane.f32.xlu0 %v447_v17 }
 0x1e7   :  { %476 = vadd.xlane.f32.xlu1 %v448_v25  ;;  %v1414_v27 = vpop.f32.mrb[12].mxu1 }
 0x1e8   :  { %v422_v28 = vpop.f32.mrb[13].mxu1  ;;  %v1791_v33 = vadd.f32 %v1414_v27, %v1266_v48 }
 0x1e9   :  { %v1787_v30 = vadd.f32 %v1266_v48, %v422_v28  ;;  %478 = vadd.xlane.f32.xlu0 %v449_v26  ;;  %v1415_v31 = vpop.f32.mrb[14].mxu1 }
 0x1ea   :  { %v425_v32 = vpop.f32.mrb[15].mxu1  ;;  %v1798_v36 = vadd.f32 %v1415_v31, %v1266_v48  ;;  %v453_v38 = vmax.f32 %v1791_v33, 0.0 }
 0x1eb   :  { %v451_v34 = vmax.f32 %v1787_v30, 0.0  ;;  %v1794_v35 = vadd.f32 %v1266_v48, %v425_v32  ;;  %480 = vadd.xlane.f32.xlu1 %v450_v29 }
 0x1ec   :  { %v454_v39 = vmax.f32 %v1798_v36, 0.0  ;;  %v1508_v36 = vld [vmem:[%s2353_s6 + $0x20] sm:$0xff]  }
 0x1ed   :  { %v452_v37 = vmax.f32 %v1794_v35, 0.0  ;;  %482 = vadd.xlane.f32.xlu0 %v451_v34 }
 0x1ef   :  { %484 = vadd.xlane.f32.xlu1 %v452_v37 }
 0x1f1   :  { %486 = vadd.xlane.f32.xlu0 %v453_v38 }
 0x1f3   :  { %488 = vadd.xlane.f32.xlu1 %v454_v39 }
 0x261   :  { %v463_v43 = vpop.xlane.xlu1 %462 }
 0x262   :  { %v492_v44 = vmul.f32 0.015625, %v463_v43  ;;  %v459_v45 = vpop.xlane.xlu0 %458 }
 0x263   :  { %v490_v46 = vmul.f32 0.015625, %v459_v45 }
 0x264   :  { %v508_v47 = vsub.f32 %v441_v54, %v492_v44 }
 0x265   :  { %v506_v48 = vsub.f32 %v439_v57, %v490_v46  ;;  %v465_v49 = vpop.xlane.xlu1 %464 }
 0x266   :  { %v493_v51 = vmul.f32 0.015625, %v465_v49  ;;  %v461_v53 = vpop.xlane.xlu0 %460  ;;  %v1833_v52 = vsel %vm457_vm0, %v508_v47, 0.0 }
 0x267   :  { %v491_v56 = vmul.f32 0.015625, %v461_v53  ;;  %v1823_v61 = vsel %vm457_vm0, %v506_v48, 0.0  ;;  %v540_v55 = vmul.f32 %v1833_v52, %v1833_v52 }
 0x268   :  { %v538_v62 = vmul.f32 %v1823_v61, %v1823_v61  ;;  %v509_v0 = vsub.f32 %v442_v59, %v493_v51 }
 0x269   :  { %v507_v50 = vsub.f32 %v440_v60, %v491_v56 }
 0x26a   :  { %v467_v54 = vpop.xlane.xlu0 %466  ;;  %554 = vadd.xlane.f32.xlu0 %v538_v62  ;;  %v1847_v60 = vsel %vm457_vm0, %v509_v0, 0.0 }
 0x26b   :  { %v494_v57 = vmul.f32 0.015625, %v467_v54  ;;  %v1837_v1 = vsel %vm457_vm0, %v507_v50, 0.0  ;;  %v541_v63 = vmul.f32 %v1847_v60, %v1847_v60 }
 0x26c   :  { %v469_v8 = vpop.xlane.xlu1 %468  ;;  %v539_v9 = vmul.f32 %v1837_v1, %v1837_v1 }
 0x26d   :  { %v510_v58 = vsub.f32 %v443_v3, %v494_v57  ;;  %v495_v59 = vmul.f32 0.015625, %v469_v8 }
 0x26e   :  { %v471_v12 = vpop.xlane.xlu0 %470  ;;  %556 = vadd.xlane.f32.xlu1 %v539_v9  ;;  %558 = vadd.xlane.f32.xlu0 %v540_v55 }
 0x26f   :  { %v511_v13 = vsub.f32 %v444_v6, %v495_v59  ;;  %v496_v27 = vmul.f32 0.015625, %v471_v12  ;;  %v1853_v28 = vsel %vm457_vm0, %v510_v58, 0.0  ;;  %v1506_v58 = vld [vmem:[%s2353_s6 + $0x10] sm:$0xff]  }
 0x270   :  { %v473_v31 = vpop.xlane.xlu1 %472  ;;  %v542_v3 = vmul.f32 %v1853_v28, %v1853_v28 }
 0x271   :  { %v512_v32 = vsub.f32 %v445_v7, %v496_v27  ;;  %v497_v40 = vmul.f32 0.015625, %v473_v31  ;;  %v1863_v4 = vsel %vm457_vm0, %v511_v13, 0.0 }
 0x272   :  { %v475_v6 = vpop.xlane.xlu0 %474  ;;  %560 = vadd.xlane.f32.xlu1 %v541_v63  ;;  %562 = vadd.xlane.f32.xlu0 %v542_v3  ;;  %v543_v2 = vmul.f32 %v1863_v4, %v1863_v4 }
 0x273   :  { %v513_v41 = vsub.f32 %v446_v10, %v497_v40  ;;  %v498_v43 = vmul.f32 0.015625, %v475_v6  ;;  %v1869_v44 = vsel %vm457_vm0, %v512_v32, 0.0  ;;  %v1509_v6 = vld [vmem:[%s2353_s6 + $0x28] sm:$0xff]  }
 0x274   :  { %v477_v45 = vpop.xlane.xlu1 %476  ;;  %v544_v7 = vmul.f32 %v1869_v44, %v1869_v44 }
 0x275   :  { %v514_v46 = vsub.f32 %v447_v17, %v498_v43  ;;  %v499_v47 = vmul.f32 0.015625, %v477_v45  ;;  %v1879_v5 = vsel %vm457_vm0, %v513_v41, 0.0  ;;  %v1510_v41 = vld [vmem:[%s2353_s6 + $0x30] sm:$0xff]   ;;  %v1511_v43 = vld [vmem:[%s2353_s6 + $0x38] sm:$0xff]  }
 0x276   :  { %v479_v10 = vpop.xlane.xlu0 %478  ;;  %564 = vadd.xlane.f32.xlu1 %v543_v2  ;;  %566 = vadd.xlane.f32.xlu0 %v544_v7  ;;  %v545_v11 = vmul.f32 %v1879_v5, %v1879_v5 }
 0x277   :  { %v515_v48 = vsub.f32 %v448_v25, %v499_v47  ;;  %v500_v49 = vmul.f32 0.015625, %v479_v10  ;;  %v1885_v51 = vsel %vm457_vm0, %v514_v46, 0.0  ;;  %v1505_v25 = vld [vmem:[%s2353_s6 + $0x8] sm:$0xff]  }
 0x278   :  { %v481_v53 = vpop.xlane.xlu1 %480  ;;  %v546_v17 = vmul.f32 %v1885_v51, %v1885_v51  ;;  %1418 = vmatprep.subr.bf16.mxu0 %v1505_v25 }
 0x279   :  { %v516_v56 = vsub.f32 %v449_v26, %v500_v49  ;;  %v501_v62 = vmul.f32 0.015625, %v481_v53  ;;  %v1895_v23 = vsel %vm457_vm0, %v515_v48, 0.0  ;;  %1419 = vmatpush3.bf16.msra.mxu0 %v1505_v25 }
 0x27a   :  { %568 = vadd.xlane.f32.xlu1 %v545_v11  ;;  %570 = vadd.xlane.f32.xlu0 %v546_v17  ;;  %v483_v0 = vpop.xlane.xlu0 %482  ;;  %v547_v57 = vmul.f32 %v1895_v23, %v1895_v23 }
 0x27b   :  { %v517_v50 = vsub.f32 %v450_v29, %v501_v62  ;;  %v502_v54 = vmul.f32 0.015625, %v483_v0  ;;  %v1904_v16 = vsel %vm457_vm0, %v516_v56, 0.0  ;;  %1420 = vmatprep.subr.bf16.mxu0 %v1506_v58 }
 0x27c   :  { %v485_v26 = vpop.xlane.xlu1 %484  ;;  %v548_v8 = vmul.f32 %v1904_v16, %v1904_v16 }
 0x27d   :  { %v518_v9 = vsub.f32 %v451_v34, %v502_v54  ;;  %v503_v55 = vmul.f32 0.015625, %v485_v26  ;;  %v1914_v24 = vsel %vm457_vm0, %v517_v50, 0.0  ;;  %1421 = vmatpush3.bf16.msra.mxu0 %v1506_v58 }
 0x27e   :  { %572 = vadd.xlane.f32.xlu1 %v547_v57  ;;  %574 = vadd.xlane.f32.xlu0 %v548_v8  ;;  %v487_v29 = vpop.xlane.xlu0 %486  ;;  %v549_v13 = vmul.f32 %v1914_v24, %v1914_v24 }
 0x27f   :  { %v519_v59 = vsub.f32 %v452_v37, %v503_v55  ;;  %v504_v12 = vmul.f32 0.015625, %v487_v29  ;;  %v1923_v30 = vsel %vm457_vm0, %v518_v9, 0.0  ;;  %v1507_v37 = vld [vmem:[%s2353_s6 + $0x18] sm:$0xff]  }
 0x280   :  { %v489_v34 = vpop.xlane.xlu1 %488  ;;  %v550_v27 = vmul.f32 %v1923_v30, %v1923_v30  ;;  %1422 = vmatprep.subr.bf16.mxu0 %v1507_v37 }
 0x281   :  { %v520_v31 = vsub.f32 %v453_v38, %v504_v12  ;;  %v505_v63 = vmul.f32 0.015625, %v489_v34  ;;  %v1933_v35 = vsel %vm457_vm0, %v519_v59, 0.0  ;;  %1423 = vmatpush3.bf16.msra.mxu0 %v1507_v37  ;;  %v1970_v12 = vld [vmem:[%s2354_s4] ss:$0 sm:$0xff] }
 0x282   :  { %576 = vadd.xlane.f32.xlu1 %v549_v13  ;;  %578 = vadd.xlane.f32.xlu0 %v550_v27  ;;  %v551_v33 = vmul.f32 %v1933_v35, %v1933_v35 }
 0x283   :  { %v521_v3 = vsub.f32 %v454_v39, %v505_v63  ;;  %v1942_v32 = vsel %vm457_vm0, %v520_v31, 0.0  ;;  %1424 = vmatprep.subr.bf16.mxu0 %v1508_v36 }
 0x284   :  { %v552_v38 = vmul.f32 %v1942_v32, %v1942_v32 }
 0x285   :  { %v1950_v40 = vsel %vm457_vm0, %v521_v3, 0.0  ;;  %1425 = vmatpush3.bf16.msra.mxu0 %v1508_v36 }
 0x286   :  { %580 = vadd.xlane.f32.xlu1 %v551_v33  ;;  %582 = vadd.xlane.f32.xlu0 %v552_v38  ;;  %v553_v39 = vmul.f32 %v1950_v40, %v1950_v40 }
 0x287   :  { %1426 = vmatprep.subr.bf16.mxu0 %v1509_v6 }
 0x289   :  { %1427 = vmatpush3.bf16.msra.mxu0 %v1509_v6 }
 0x28a   :  { %584 = vadd.xlane.f32.xlu1 %v553_v39  ;;  %1428 = vmatprep.subr.bf16.mxu0 %v1510_v41 }
 0x28d   :  { %1429 = vmatpush3.bf16.msra.mxu0 %v1510_v41  ;;  %v1978_v41 = vld [vmem:[%s2355_s5] ss:$0 sm:$0xff] }
 0x28e   :  { %1430 = vmatprep.subr.bf16.mxu0 %v1511_v43 }
 0x291   :  { %1431 = vmatpush3.bf16.msra.mxu0 %v1511_v43 }
 0x2f7   :  { %v555_v45 = vpop.xlane.xlu0 %554 }
 0x2f8   :  { %v586_v2 = vmul.f32 0.015625, %v555_v45 }
 0x2fa   :  { %v602_v7 = vadd.f32 1e-05, %v586_v2 }
 0x2fb   :  { %v557_v46 = vpop.xlane.xlu1 %556  ;;  %v559_v47 = vpop.xlane.xlu0 %558 }
 0x2fc   :  { %1512 = vrsqrt.f32 %v602_v7  ;;  %v587_v10 = vmul.f32 0.015625, %v557_v46  ;;  %v588_v48 = vmul.f32 0.015625, %v559_v47 }
 0x2fe   :  { %v603_v49 = vadd.f32 1e-05, %v587_v10  ;;  %v604_v53 = vadd.f32 1e-05, %v588_v48 }
 0x2ff   :  { %v561_v11 = vpop.xlane.xlu1 %560  ;;  %v563_v17 = vpop.xlane.xlu0 %562 }
 0x300   :  { %1514 = vrsqrt.f32 %v603_v49  ;;  %v589_v56 = vmul.f32 0.015625, %v561_v11  ;;  %v590_v62 = vmul.f32 0.015625, %v563_v17 }
 0x301   :  { %1516 = vrsqrt.f32 %v604_v53 }
 0x302   :  { %v605_v25 = vadd.f32 1e-05, %v589_v56  ;;  %v606_v0 = vadd.f32 1e-05, %v590_v62 }
 0x303   :  { %v565_v50 = vpop.xlane.xlu1 %564  ;;  %v567_v54 = vpop.xlane.xlu0 %566 }
 0x304   :  { %1518 = vrsqrt.f32 %v605_v25  ;;  %v591_v26 = vmul.f32 0.015625, %v565_v50  ;;  %v592_v57 = vmul.f32 0.015625, %v567_v54 }
 0x305   :  { %1520 = vrsqrt.f32 %v606_v0 }
 0x306   :  { %v1513_v8 = vpop.eup %1512  ;;  %v607_v9 = vadd.f32 1e-05, %v591_v26  ;;  %v608_v55 = vadd.f32 1e-05, %v592_v57 }
 0x307   :  { %v569_v29 = vpop.xlane.xlu1 %568  ;;  %v571_v58 = vpop.xlane.xlu0 %570  ;;  %v634_v59 = vmul.f32 %v1513_v8, %v1823_v61 }
 0x308   :  { %1522 = vrsqrt.f32 %v607_v9  ;;  %v593_v34 = vmul.f32 0.015625, %v569_v29  ;;  %v594_v13 = vmul.f32 0.015625, %v571_v58 }
 0x309   :  { %1524 = vrsqrt.f32 %v608_v55  ;;  %v656_v36 = vmul.f32 %v1970_v12, %v634_v59 }
 0x30a   :  { %v1515_v27 = vpop.eup %1514  ;;  %v609_v31 = vadd.f32 1e-05, %v593_v34  ;;  %v610_v63 = vadd.f32 1e-05, %v594_v13 }
 0x30b   :  { %v1517_v37 = vpop.eup %1516  ;;  %v573_v3 = vpop.xlane.xlu1 %572  ;;  %v635_v38 = vmul.f32 %v1515_v27, %v1837_v1  ;;  %v678_v48 = vadd.f32 %v1978_v41, %v656_v36 }
 0x30c   :  { %v575_v33 = vpop.xlane.xlu0 %574  ;;  %v636_v61 = vmul.f32 %v1517_v37, %v1833_v52  ;;  %1526 = vrsqrt.f32 %v609_v31  ;;  %v595_v39 = vmul.f32 0.015625, %v573_v3 }
 0x30d   :  { %v596_v6 = vmul.f32 0.015625, %v575_v33  ;;  %1528 = vrsqrt.f32 %v610_v63  ;;  %v657_v43 = vmul.f32 %v1970_v12, %v635_v38 }
 0x30e   :  { %v1519_v45 = vpop.eup %1518  ;;  %v611_v2 = vadd.f32 1e-05, %v595_v39  ;;  %v658_v1 = vmul.f32 %v1970_v12, %v636_v61 }
 0x30f   :  { %v612_v7 = vadd.f32 1e-05, %v596_v6  ;;  %v1521_v46 = vpop.eup %1520  ;;  %v637_v47 = vmul.f32 %v1519_v45, %v1847_v60  ;;  %v577_v52 = vpop.xlane.xlu1 %576  ;;  %v679_v49 = vadd.f32 %v1978_v41, %v657_v43 }
 0x310   :  { %v579_v10 = vpop.xlane.xlu0 %578  ;;  %1530 = vrsqrt.f32 %v611_v2  ;;  %v597_v53 = vmul.f32 0.015625, %v577_v52  ;;  %v638_v62 = vmul.f32 %v1521_v46, %v1853_v28  ;;  %v680_v57 = vadd.f32 %v1978_v41, %v658_v1 }
 0x311   :  { %v598_v11 = vmul.f32 0.015625, %v579_v10  ;;  %v659_v17 = vmul.f32 %v1970_v12, %v637_v47  ;;  %1532 = vrsqrt.f32 %v612_v7  ;;  %v694_v56 = vpack.c.bf16 %v679_v49, %v678_v48 }
 0x312   :  { %v1523_v25 = vpop.eup %1522  ;;  %v613_v0 = vadd.f32 1e-05, %v597_v53  ;;  %v660_v55 = vmul.f32 %v1970_v12, %v638_v62 }
 0x313   :  { %v614_v50 = vadd.f32 1e-05, %v598_v11  ;;  %v1525_v54 = vpop.eup %1524  ;;  %v581_v60 = vpop.xlane.xlu1 %580  ;;  %1432 = vmatprep.mubr.bf16.mxu0 %v694_v56  ;;  %v681_v8 = vadd.f32 %v1978_v41, %v659_v17  ;;  %v639_v9 = vmul.f32 %v1523_v25, %v1863_v4 }
 0x314   :  { %v583_v26 = vpop.xlane.xlu0 %582  ;;  %1534 = vrsqrt.f32 %v613_v0  ;;  %v599_v29 = vmul.f32 0.015625, %v581_v60  ;;  %v640_v28 = vmul.f32 %v1525_v54, %v1869_v44  ;;  %v682_v3 = vadd.f32 %v1978_v41, %v660_v55 }
 0x315   :  { %v600_v58 = vmul.f32 0.015625, %v583_v26  ;;  %1536 = vrsqrt.f32 %v614_v50  ;;  %v695_v59 = vpack.c.bf16 %v681_v8, %v680_v57  ;;  %v661_v34 = vmul.f32 %v1970_v12, %v639_v9 }
 0x316   :  { %v1527_v13 = vpop.eup %1526  ;;  %v615_v27 = vadd.f32 1e-05, %v599_v29  ;;  %v662_v38 = vmul.f32 %v1970_v12, %v640_v28 }
 0x317   :  { %v616_v31 = vadd.f32 1e-05, %v600_v58  ;;  %v1529_v63 = vpop.eup %1528  ;;  %v585_v37 = vpop.xlane.xlu1 %584  ;;  %1433 = vmatmul.mubr.bf16.vlgmr.msra.gmra.mrb[16].mxu0 %v695_v59  ;;  %v683_v4 = vadd.f32 %v1978_v41, %v661_v34  ;;  %v641_v33 = vmul.f32 %v1527_v13, %v1879_v5 }
 0x318   :  { %1538 = vrsqrt.f32 %v615_v27  ;;  %v601_v44 = vmul.f32 0.015625, %v585_v37  ;;  %v642_v36 = vmul.f32 %v1529_v63, %v1885_v51  ;;  %v684_v2 = vadd.f32 %v1978_v41, %v662_v38 }
 0x319   :  { %1540 = vrsqrt.f32 %v616_v31  ;;  %v696_v61 = vpack.c.bf16 %v683_v4, %v682_v3  ;;  %v663_v39 = vmul.f32 %v1970_v12, %v641_v33 }
 0x31a   :  { %v1531_v6 = vpop.eup %1530  ;;  %v617_v43 = vadd.f32 1e-05, %v601_v44  ;;  %v664_v46 = vmul.f32 %v1970_v12, %v642_v36 }
 0x31b   :  { %v1533_v45 = vpop.eup %1532  ;;  %1436 = vmatprep.mubr.bf16.mxu0 %v696_v61  ;;  %v685_v7 = vadd.f32 %v1978_v41, %v663_v39  ;;  %v643_v5 = vmul.f32 %v1531_v6, %v1895_v23 }
 0x31c   :  { %1542 = vrsqrt.f32 %v617_v43  ;;  %v644_v1 = vmul.f32 %v1533_v45, %v1904_v16  ;;  %v686_v48 = vadd.f32 %v1978_v41, %v664_v46  ;;  %v1285_v46 = vld [vmem:[%s2356_s7] ss:$0 sm:$0xff] }
 0x31d   :  { %v697_v51 = vpack.c.bf16 %v685_v7, %v684_v2  ;;  %v665_v47 = vmul.f32 %v1970_v12, %v643_v5 }
 0x31e   :  { %v1535_v52 = vpop.eup %1534  ;;  %v666_v11 = vmul.f32 %v1970_v12, %v644_v1 }
 0x31f   :  { %v1537_v10 = vpop.eup %1536  ;;  %1437 = vmatmul.mubr.bf16.gmra.mrb[20].mxu0 %v697_v51  ;;  %v687_v49 = vadd.f32 %v1978_v41, %v665_v47  ;;  %v645_v53 = vmul.f32 %v1535_v52, %v1914_v24 }
 0x320   :  { %v646_v23 = vmul.f32 %v1537_v10, %v1923_v30  ;;  %v688_v25 = vadd.f32 %v1978_v41, %v666_v11 }
 0x321   :  { %v698_v17 = vpack.c.bf16 %v687_v49, %v686_v48  ;;  %v667_v56 = vmul.f32 %v1970_v12, %v645_v53 }
 0x322   :  { %v1539_v16 = vpop.eup %1538  ;;  %v668_v54 = vmul.f32 %v1970_v12, %v646_v23 }
 0x323   :  { %v1541_v62 = vpop.eup %1540  ;;  %1440 = vmatprep.mubr.bf16.mxu0 %v698_v17  ;;  %v689_v0 = vadd.f32 %v1978_v41, %v667_v56  ;;  %v647_v50 = vmul.f32 %v1539_v16, %v1933_v35 }
 0x324   :  { %v648_v24 = vmul.f32 %v1541_v62, %v1942_v32  ;;  %v690_v57 = vadd.f32 %v1978_v41, %v668_v54 }
 0x325   :  { %v699_v60 = vpack.c.bf16 %v689_v0, %v688_v25  ;;  %v669_v26 = vmul.f32 %v1970_v12, %v647_v50 }
 0x326   :  { %v1543_v30 = vpop.eup %1542  ;;  %v670_v55 = vmul.f32 %v1970_v12, %v648_v24 }
 0x327   :  { %1441 = vmatmul.mubr.bf16.gmra.mrb[24].mxu0 %v699_v60  ;;  %v691_v8 = vadd.f32 %v1978_v41, %v669_v26  ;;  %v649_v9 = vmul.f32 %v1543_v30, %v1950_v40 }
 0x328   :  { %v692_v58 = vadd.f32 %v1978_v41, %v670_v55 }
 0x329   :  { %v700_v29 = vpack.c.bf16 %v691_v8, %v690_v57  ;;  %v671_v35 = vmul.f32 %v1970_v12, %v649_v9 }
 0x32b   :  { %1444 = vmatprep.mubr.bf16.mxu0 %v700_v29  ;;  %v693_v32 = vadd.f32 %v1978_v41, %v671_v35 }
 0x32d   :  { %v701_v28 = vpack.c.bf16 %v693_v32, %v692_v58 }
 0x32f   :  { %1445 = vmatmul.mubr.bf16.gmra.mrb[28].mxu0 %v701_v28 }
 0x3ea   :  { %v1434_v59 = vpop.f32.mrb[16].mxu0 }
 0x3eb   :  { %v800_v34 = vpop.f32.mrb[17].mxu0 }
 0x3ec   :  { %v1435_v13 = vpop.f32.mrb[18].mxu0 }
 0x3ed   :  { %v864_v27 = vpack.c.bf16 %v1435_v13, %v1434_v59  ;;  %v803_v31 = vpop.f32.mrb[19].mxu0 }
 0x3ee   :  { %v863_v63 = vpack.c.bf16 %v803_v31, %v800_v34 }
 0x3f0   :  { %1448 = vmatprep.subr.bf16.mxu1 %v863_v63 }
 0x3f1   :  { %1449 = vmatpush3.bf16.msra.mxu1 %v863_v63 }
 0x3f2   :  { %v1438_v40 = vpop.f32.mrb[20].mxu0  ;;  %1450 = vmatprep.subr.bf16.mxu1 %v864_v27 }
 0x3f3   :  { %v816_v37 = vpop.f32.mrb[21].mxu0 }
 0x3f4   :  { %v1439_v3 = vpop.f32.mrb[22].mxu0 }
 0x3f5   :  { %v866_v12 = vpack.c.bf16 %v1439_v3, %v1438_v40  ;;  %v819_v4 = vpop.f32.mrb[23].mxu0  ;;  %1451 = vmatpush3.bf16.msra.mxu1 %v864_v27 }
 0x3f6   :  { %v865_v33 = vpack.c.bf16 %v819_v4, %v816_v37 }
 0x3f8   :  { %1452 = vmatprep.subr.bf16.mxu1 %v865_v33 }
 0x3f9   :  { %1453 = vmatpush3.bf16.msra.mxu1 %v865_v33 }
 0x3fa   :  { %v1442_v41 = vpop.f32.mrb[24].mxu0  ;;  %1454 = vmatprep.subr.bf16.mxu1 %v866_v12 }
 0x3fb   :  { %v832_v38 = vpop.f32.mrb[25].mxu0 }
 0x3fc   :  { %v1443_v44 = vpop.f32.mrb[26].mxu0 }
 0x3fd   :  { %v868_v36 = vpack.c.bf16 %v1443_v44, %v1442_v41  ;;  %v835_v61 = vpop.f32.mrb[27].mxu0  ;;  %1455 = vmatpush3.bf16.msra.mxu1 %v866_v12 }
 0x3fe   :  { %v867_v39 = vpack.c.bf16 %v835_v61, %v832_v38 }
 0x400   :  { %1456 = vmatprep.subr.bf16.mxu1 %v867_v39 }
 0x401   :  { %1457 = vmatpush3.bf16.msra.mxu1 %v867_v39 }
 0x402   :  { %v1446_v6 = vpop.f32.mrb[28].mxu0  ;;  %1458 = vmatprep.subr.bf16.mxu1 %v868_v36 }
 0x403   :  { %v848_v43 = vpop.f32.mrb[29].mxu0 }
 0x404   :  { %v1447_v45 = vpop.f32.mrb[30].mxu0 }
 0x405   :  { %v870_v2 = vpack.c.bf16 %v1447_v45, %v1446_v6  ;;  %v851_v7 = vpop.f32.mrb[31].mxu0  ;;  %1459 = vmatpush3.bf16.msra.mxu1 %v868_v36 }
 0x406   :  { %v869_v5 = vpack.c.bf16 %v851_v7, %v848_v43 }
 0x408   :  { %1460 = vmatprep.subr.bf16.mxu1 %v869_v5 }
 0x409   :  { %1461 = vmatpush3.bf16.msra.mxu1 %v869_v5 }
 0x40a   :  { %1462 = vmatprep.subr.bf16.mxu1 %v870_v2 }
 0x40d   :  { %1463 = vmatpush3.bf16.msra.mxu1 %v870_v2 }
 0x410   :  { %1465 = vmatmul.mubr.bf16.vlgmr.msra.gmra.mrb[16].mxu1 %v1679_v14 }
 0x411   :  { %1468 = vmatprep.mubr.bf16.mxu1 %v1684_v15 }
 0x418   :  { %1469 = vmatmul.mubr.bf16.gmra.mrb[20].mxu1 %v1697_v18 }
 0x419   :  { %1472 = vmatprep.mubr.bf16.mxu1 %v1702_v19 }
 0x420   :  { %1473 = vmatmul.mubr.bf16.gmra.mrb[24].mxu1 %v1709_v20 }
 0x421   :  { %1476 = vmatprep.mubr.bf16.mxu1 %v1714_v21 }
 0x428   :  { %1477 = vmatmul.mubr.bf16.gmra.mrb[28].mxu1 %v1721_v22 }
 0x4e3   :  { %v1466_v1 = vpop.f32.mrb[16].mxu1 }
 0x4e4   :  { %v2034_v51 = vadd.f32 %v1466_v1, %v1285_v46  ;;  %v912_v14 = vpop.f32.mrb[17].mxu1 }
 0x4e5   :  { %v1467_v47 = vpop.f32.mrb[18].mxu1  ;;  %v2037_v18 = vadd.f32 %v1285_v46, %v912_v14 }
 0x4e6   :  { %v979_v15 = vmax.f32 %v2034_v51, 0.0  ;;  %v2039_v19 = vadd.f32 %v1467_v47, %v1285_v46  ;;  %v915_v20 = vpop.f32.mrb[19].mxu1 }
 0x4e7   :  { %v2042_v52 = vadd.f32 %v1285_v46, %v915_v20  ;;  %v977_v22 = vmax.f32 %v2037_v18, 0.0 }
 0x4e8   :  { %v980_v21 = vmax.f32 %v2039_v19, 0.0  ;;  %998 = vadd.xlane.f32.xlu0 %v979_v15 }
 0x4e9   :  { %v978_v48 = vmax.f32 %v2042_v52, 0.0 }
 0x4ea   :  { %1000 = vadd.xlane.f32.xlu1 %v980_v21 }
 0x4eb   :  { %v1470_v10 = vpop.f32.mrb[20].mxu1 }
 0x4ec   :  { %v2050_v49 = vadd.f32 %v1470_v10, %v1285_v46  ;;  %v928_v53 = vpop.f32.mrb[21].mxu1  ;;  %994 = vadd.xlane.f32.xlu0 %v977_v22 }
 0x4ed   :  { %v1471_v11 = vpop.f32.mrb[22].mxu1  ;;  %v2055_v17 = vadd.f32 %v1285_v46, %v928_v53 }
 0x4ee   :  { %v983_v23 = vmax.f32 %v2050_v49, 0.0  ;;  %v2057_v56 = vadd.f32 %v1471_v11, %v1285_v46  ;;  %v931_v16 = vpop.f32.mrb[23].mxu1  ;;  %996 = vadd.xlane.f32.xlu1 %v978_v48 }
 0x4ef   :  { %v2062_v25 = vadd.f32 %v1285_v46, %v931_v16  ;;  %v981_v0 = vmax.f32 %v2055_v17, 0.0 }
 0x4f0   :  { %v984_v62 = vmax.f32 %v2057_v56, 0.0  ;;  %1006 = vadd.xlane.f32.xlu0 %v983_v23 }
 0x4f1   :  { %v982_v54 = vmax.f32 %v2062_v25, 0.0 }
 0x4f2   :  { %1008 = vadd.xlane.f32.xlu1 %v984_v62 }
 0x4f3   :  { %v1474_v50 = vpop.f32.mrb[24].mxu1 }
 0x4f4   :  { %v2070_v24 = vadd.f32 %v1474_v50, %v1285_v46  ;;  %v944_v60 = vpop.f32.mrb[25].mxu1  ;;  %1002 = vadd.xlane.f32.xlu0 %v981_v0 }
 0x4f5   :  { %v1475_v26 = vpop.f32.mrb[26].mxu1  ;;  %v2075_v57 = vadd.f32 %v1285_v46, %v944_v60 }
 0x4f6   :  { %v987_v30 = vmax.f32 %v2070_v24, 0.0  ;;  %v2077_v8 = vadd.f32 %v1475_v26, %v1285_v46  ;;  %v947_v9 = vpop.f32.mrb[27].mxu1  ;;  %1004 = vadd.xlane.f32.xlu1 %v982_v54 }
 0x4f7   :  { %v2082_v29 = vadd.f32 %v1285_v46, %v947_v9  ;;  %v985_v35 = vmax.f32 %v2075_v57, 0.0 }
 0x4f8   :  { %v988_v55 = vmax.f32 %v2077_v8, 0.0  ;;  %1014 = vadd.xlane.f32.xlu0 %v987_v30 }
 0x4f9   :  { %v986_v32 = vmax.f32 %v2082_v29, 0.0 }
 0x4fa   :  { %1016 = vadd.xlane.f32.xlu1 %v988_v55 }
 0x4fb   :  { %v1478_v58 = vpop.f32.mrb[28].mxu1 }
 0x4fc   :  { %v960_v28 = vpop.f32.mrb[29].mxu1  ;;  %1010 = vadd.xlane.f32.xlu0 %v985_v35  ;;  %v2096_v27 = vadd.f32 %v1478_v58, %v1285_v46 }
 0x4fd   :  { %v2092_v59 = vadd.f32 %v1285_v46, %v960_v28  ;;  %v1479_v34 = vpop.f32.mrb[30].mxu1 }
 0x4fe   :  { %v963_v13 = vpop.f32.mrb[31].mxu1  ;;  %1012 = vadd.xlane.f32.xlu1 %v986_v32  ;;  %v2101_v40 = vadd.f32 %v1479_v34, %v1285_v46  ;;  %v991_v3 = vmax.f32 %v2096_v27, 0.0 }
 0x4ff   :  { %v989_v31 = vmax.f32 %v2092_v59, 0.0  ;;  %v2099_v63 = vadd.f32 %v1285_v46, %v963_v13 }
 0x500   :  { %v992_v12 = vmax.f32 %v2101_v40, 0.0 }
 0x501   :  { %v990_v37 = vmax.f32 %v2099_v63, 0.0  ;;  %1018 = vadd.xlane.f32.xlu0 %v989_v31 }
 0x503   :  { %1020 = vadd.xlane.f32.xlu1 %v990_v37 }
 0x505   :  { %1022 = vadd.xlane.f32.xlu0 %v991_v3 }
 0x507   :  { %1024 = vadd.xlane.f32.xlu1 %v992_v12 }
 0x575   :  { %v999_v4 = vpop.xlane.xlu0 %998 }
 0x576   :  { %v1028_v33 = vmul.f32 0.03125, %v999_v4 }
 0x577   :  { %v1001_v41 = vpop.xlane.xlu1 %1000 }
 0x578   :  { %v1044_v38 = vsub.f32 %v979_v15, %v1028_v33  ;;  %v1029_v44 = vmul.f32 0.03125, %v1001_v41 }
 0x579   :  { %v995_v36 = vpop.xlane.xlu0 %994 }
 0x57a   :  { %v1045_v61 = vsub.f32 %v980_v21, %v1029_v44  ;;  %v1026_v39 = vmul.f32 0.03125, %v995_v36  ;;  %v2121_v6 = vsel %vm993_vm1, %v1044_v38, 0.0 }
 0x57b   :  { %v997_v43 = vpop.xlane.xlu1 %996  ;;  %v1076_v45 = vmul.f32 %v2121_v6, %v2121_v6 }
 0x57c   :  { %v1042_v2 = vsub.f32 %v977_v22, %v1026_v39  ;;  %v1027_v7 = vmul.f32 0.03125, %v997_v43  ;;  %v2129_v5 = vsel %vm993_vm1, %v1045_v61, 0.0 }
 0x57d   :  { %1094 = vadd.xlane.f32.xlu0 %v1076_v45  ;;  %v1007_v46 = vpop.xlane.xlu0 %1006  ;;  %v1077_v1 = vmul.f32 %v2129_v5, %v2129_v5 }
 0x57e   :  { %v1043_v51 = vsub.f32 %v978_v48, %v1027_v7  ;;  %v1032_v14 = vmul.f32 0.03125, %v1007_v46  ;;  %v2137_v47 = vsel %vm993_vm1, %v1042_v2, 0.0 }
 0x57f   :  { %1096 = vadd.xlane.f32.xlu1 %v1077_v1  ;;  %v1009_v15 = vpop.xlane.xlu1 %1008  ;;  %v1074_v18 = vmul.f32 %v2137_v47, %v2137_v47 }
 0x580   :  { %v1048_v19 = vsub.f32 %v983_v23, %v1032_v14  ;;  %v1033_v20 = vmul.f32 0.03125, %v1009_v15  ;;  %v2145_v21 = vsel %vm993_vm1, %v1043_v51, 0.0 }
 0x581   :  { %1090 = vadd.xlane.f32.xlu0 %v1074_v18  ;;  %v1003_v52 = vpop.xlane.xlu0 %1002  ;;  %v1075_v22 = vmul.f32 %v2145_v21, %v2145_v21 }
 0x582   :  { %v1049_v10 = vsub.f32 %v984_v62, %v1033_v20  ;;  %v1030_v48 = vmul.f32 0.03125, %v1003_v52  ;;  %v2153_v53 = vsel %vm993_vm1, %v1048_v19, 0.0 }
 0x583   :  { %1092 = vadd.xlane.f32.xlu1 %v1075_v22  ;;  %v1005_v49 = vpop.xlane.xlu1 %1004  ;;  %v1080_v11 = vmul.f32 %v2153_v53, %v2153_v53 }
 0x584   :  { %v1046_v23 = vsub.f32 %v981_v0, %v1030_v48  ;;  %v1031_v16 = vmul.f32 0.03125, %v1005_v49  ;;  %v2161_v50 = vsel %vm993_vm1, %v1049_v10, 0.0 }
 0x585   :  { %1102 = vadd.xlane.f32.xlu0 %v1080_v11  ;;  %v1015_v56 = vpop.xlane.xlu0 %1014  ;;  %v1081_v62 = vmul.f32 %v2161_v50, %v2161_v50 }
 0x586   :  { %v1047_v60 = vsub.f32 %v982_v54, %v1031_v16  ;;  %v1036_v26 = vmul.f32 0.03125, %v1015_v56  ;;  %v2169_v9 = vsel %vm993_vm1, %v1046_v23, 0.0 }
 0x587   :  { %1104 = vadd.xlane.f32.xlu1 %v1081_v62  ;;  %v1017_v17 = vpop.xlane.xlu1 %1016  ;;  %v1078_v0 = vmul.f32 %v2169_v9, %v2169_v9 }
 0x588   :  { %v1052_v58 = vsub.f32 %v987_v30, %v1036_v26  ;;  %v1037_v28 = vmul.f32 0.03125, %v1017_v17  ;;  %v2177_v34 = vsel %vm993_vm1, %v1047_v60, 0.0 }
 0x589   :  { %1098 = vadd.xlane.f32.xlu0 %v1078_v0  ;;  %v1011_v25 = vpop.xlane.xlu0 %1010  ;;  %v1079_v54 = vmul.f32 %v2177_v34, %v2177_v34 }
 0x58a   :  { %v1053_v13 = vsub.f32 %v988_v55, %v1037_v28  ;;  %v1034_v4 = vmul.f32 0.03125, %v1011_v25  ;;  %v2185_v33 = vsel %vm993_vm1, %v1052_v58, 0.0 }
 0x58b   :  { %1100 = vadd.xlane.f32.xlu1 %v1079_v54  ;;  %v1013_v24 = vpop.xlane.xlu1 %1012  ;;  %v1084_v30 = vmul.f32 %v2185_v33, %v2185_v33 }
 0x58c   :  { %v1050_v41 = vsub.f32 %v985_v35, %v1034_v4  ;;  %v1035_v38 = vmul.f32 0.03125, %v1013_v24  ;;  %v2193_v44 = vsel %vm993_vm1, %v1053_v13, 0.0  ;;  %v2246_v13 = vld [vmem:[%s2357_s8] ss:$0 sm:$0xff] }
 0x58d   :  { %1110 = vadd.xlane.f32.xlu0 %v1084_v30  ;;  %v1085_v8 = vmul.f32 %v2193_v44, %v2193_v44 }
 0x58e   :  { %v1051_v55 = vsub.f32 %v986_v32, %v1035_v38  ;;  %v1019_v36 = vpop.xlane.xlu0 %1018  ;;  %v2201_v61 = vsel %vm993_vm1, %v1050_v41, 0.0 }
 0x58f   :  { %v1038_v39 = vmul.f32 0.03125, %v1019_v36  ;;  %1112 = vadd.xlane.f32.xlu1 %v1085_v8  ;;  %v1082_v57 = vmul.f32 %v2201_v61, %v2201_v61  ;;  %v2252_v8 = vld [vmem:[%s2358_s9] ss:$0 sm:$0xff] }
 0x590   :  { %v1021_v35 = vpop.xlane.xlu1 %1020  ;;  %v2207_v43 = vsel %vm993_vm1, %v1051_v55, 0.0 }
 0x591   :  { %v1054_v45 = vsub.f32 %v989_v31, %v1038_v39  ;;  %v1039_v29 = vmul.f32 0.03125, %v1021_v35  ;;  %1106 = vadd.xlane.f32.xlu0 %v1082_v57  ;;  %v1083_v32 = vmul.f32 %v2207_v43, %v2207_v43 }
 0x592   :  { %v1023_v2 = vpop.xlane.xlu0 %1022 }
 0x593   :  { %v1055_v7 = vsub.f32 %v990_v37, %v1039_v29  ;;  %v1040_v46 = vmul.f32 0.03125, %v1023_v2  ;;  %1108 = vadd.xlane.f32.xlu1 %v1083_v32  ;;  %v2217_v1 = vsel %vm993_vm1, %v1054_v45, 0.0 }
 0x594   :  { %v1025_v51 = vpop.xlane.xlu1 %1024  ;;  %v1086_v59 = vmul.f32 %v2217_v1, %v2217_v1 }
 0x595   :  { %v1056_v31 = vsub.f32 %v991_v3, %v1040_v46  ;;  %v1041_v14 = vmul.f32 0.03125, %v1025_v51  ;;  %v2225_v15 = vsel %vm993_vm1, %v1055_v7, 0.0 }
 0x596   :  { %1114 = vadd.xlane.f32.xlu0 %v1086_v59  ;;  %v1087_v63 = vmul.f32 %v2225_v15, %v2225_v15 }
 0x597   :  { %v1057_v37 = vsub.f32 %v992_v12, %v1041_v14  ;;  %v2233_v18 = vsel %vm993_vm1, %v1056_v31, 0.0 }
 0x598   :  { %1116 = vadd.xlane.f32.xlu1 %v1087_v63  ;;  %v1088_v27 = vmul.f32 %v2233_v18, %v2233_v18 }
 0x599   :  { %v2239_v3 = vsel %vm993_vm1, %v1057_v37, 0.0 }
 0x59a   :  { %1118 = vadd.xlane.f32.xlu0 %v1088_v27  ;;  %v1089_v19 = vmul.f32 %v2239_v3, %v2239_v3 }
 0x59c   :  { %1120 = vadd.xlane.f32.xlu1 %v1089_v19 }
 0x60a   :  { %v1095_v20 = vpop.xlane.xlu0 %1094 }
 0x60b   :  { %v1124_v40 = vmul.f32 0.03125, %v1095_v20 }
 0x60c   :  { %v1097_v12 = vpop.xlane.xlu1 %1096 }
 0x60d   :  { %v1140_v52 = vadd.f32 1e-05, %v1124_v40  ;;  %v1125_v22 = vmul.f32 0.03125, %v1097_v12 }
 0x60e   :  { %v1091_v10 = vpop.xlane.xlu0 %1090 }
 0x60f   :  { %1544 = vrsqrt.f32 %v1140_v52  ;;  %v1141_v48 = vadd.f32 1e-05, %v1125_v22  ;;  %v1122_v49 = vmul.f32 0.03125, %v1091_v10 }
 0x610   :  { %v1093_v11 = vpop.xlane.xlu1 %1092 }
 0x611   :  { %1546 = vrsqrt.f32 %v1141_v48  ;;  %v1138_v23 = vadd.f32 1e-05, %v1122_v49  ;;  %v1123_v42 = vmul.f32 0.03125, %v1093_v11 }
 0x612   :  { %v1103_v16 = vpop.xlane.xlu0 %1102 }
 0x613   :  { %1548 = vrsqrt.f32 %v1138_v23  ;;  %v1139_v56 = vadd.f32 1e-05, %v1123_v42  ;;  %v1128_v62 = vmul.f32 0.03125, %v1103_v16 }
 0x614   :  { %v1105_v60 = vpop.xlane.xlu1 %1104 }
 0x615   :  { %1550 = vrsqrt.f32 %v1139_v56  ;;  %v1144_v26 = vadd.f32 1e-05, %v1128_v62  ;;  %v1129_v17 = vmul.f32 0.03125, %v1105_v60 }
 0x616   :  { %v1099_v0 = vpop.xlane.xlu0 %1098 }
 0x617   :  { %1552 = vrsqrt.f32 %v1144_v26  ;;  %v1145_v58 = vadd.f32 1e-05, %v1129_v17  ;;  %v1126_v28 = vmul.f32 0.03125, %v1099_v0 }
 0x618   :  { %v1101_v25 = vpop.xlane.xlu1 %1100 }
 0x619   :  { %v1545_v54 = vpop.eup %1544  ;;  %1554 = vrsqrt.f32 %v1145_v58  ;;  %v1142_v4 = vadd.f32 1e-05, %v1126_v28  ;;  %v1127_v24 = vmul.f32 0.03125, %v1101_v25 }
 0x61a   :  { %v1172_v30 = vmul.f32 %v1545_v54, %v2121_v6  ;;  %v1111_v41 = vpop.xlane.xlu0 %1110 }
 0x61b   :  { %v1547_v38 = vpop.eup %1546  ;;  %1556 = vrsqrt.f32 %v1142_v4  ;;  %v1143_v55 = vadd.f32 1e-05, %v1127_v24  ;;  %v1132_v36 = vmul.f32 0.03125, %v1111_v41 }
 0x61c   :  { %v1194_v39 = vmul.f32 %v2246_v13, %v1172_v30  ;;  %v1173_v57 = vmul.f32 %v1547_v38, %v2129_v5  ;;  %v1113_v35 = vpop.xlane.xlu1 %1112 }
 0x61d   :  { %v1549_v45 = vpop.eup %1548  ;;  %1558 = vrsqrt.f32 %v1143_v55  ;;  %v1148_v29 = vadd.f32 1e-05, %v1132_v36  ;;  %v1133_v32 = vmul.f32 0.03125, %v1113_v35 }
 0x61e   :  { %v1216_v6 = vadd.f32 %v2252_v8, %v1194_v39  ;;  %v1195_v2 = vmul.f32 %v2246_v13, %v1173_v57  ;;  %v1170_v7 = vmul.f32 %v1549_v45, %v2137_v47  ;;  %v1107_v46 = vpop.xlane.xlu0 %1106 }
 0x61f   :  { %v1551_v51 = vpop.eup %1550  ;;  %1560 = vrsqrt.f32 %v1148_v29  ;;  %v1149_v59 = vadd.f32 1e-05, %v1133_v32  ;;  %v1130_v31 = vmul.f32 0.03125, %v1107_v46 }
 0x620   :  { %1232 = vst [vmem:[%s2359_s10 + $0x10] sm:$0xff] %v1216_v6  ;;  %v1217_v5 = vadd.f32 %v2252_v8, %v1195_v2  ;;  %v1192_v14 = vmul.f32 %v2246_v13, %v1170_v7  ;;  %v1171_v63 = vmul.f32 %v1551_v51, %v2145_v21  ;;  %v1109_v37 = vpop.xlane.xlu1 %1108 }
 0x621   :  { %v1553_v27 = vpop.eup %1552  ;;  %1562 = vrsqrt.f32 %v1149_v59  ;;  %v1146_v19 = vadd.f32 1e-05, %v1130_v31  ;;  %v1131_v47 = vmul.f32 0.03125, %v1109_v37 }
 0x622   :  { %1233 = vst [vmem:[%s2359_s10 + $0x18] sm:$0xff] %v1217_v5  ;;  %v1214_v20 = vadd.f32 %v2252_v8, %v1192_v14  ;;  %v1193_v40 = vmul.f32 %v2246_v13, %v1171_v63  ;;  %v1176_v12 = vmul.f32 %v1553_v27, %v2153_v53 }
 0x623   :  { %v1555_v52 = vpop.eup %1554  ;;  %1564 = vrsqrt.f32 %v1146_v19  ;;  %v1147_v22 = vadd.f32 1e-05, %v1131_v47  ;;  %v1115_v10 = vpop.xlane.xlu0 %1114 }
 0x624   :  { %1230 = vst [vmem:[%s2359_s10] sm:$0xff] %v1214_v20  ;;  %v1215_v21 = vadd.f32 %v2252_v8, %v1193_v40  ;;  %v1198_v48 = vmul.f32 %v2246_v13, %v1176_v12  ;;  %v1177_v49 = vmul.f32 %v1555_v52, %v2161_v50  ;;  %v1134_v11 = vmul.f32 0.03125, %v1115_v10 }
 0x625   :  { %v1557_v23 = vpop.eup %1556  ;;  %1566 = vrsqrt.f32 %v1147_v22  ;;  %v1117_v42 = vpop.xlane.xlu1 %1116 }
 0x626   :  { %1231 = vst [vmem:[%s2359_s10 + $0x8] sm:$0xff] %v1215_v21  ;;  %v1220_v53 = vadd.f32 %v2252_v8, %v1198_v48  ;;  %v1199_v16 = vmul.f32 %v2246_v13, %v1177_v49  ;;  %v1174_v56 = vmul.f32 %v1557_v23, %v2169_v9  ;;  %v1150_v62 = vadd.f32 1e-05, %v1134_v11 }
 0x627   :  { %v1559_v60 = vpop.eup %1558  ;;  %v1135_v26 = vmul.f32 0.03125, %v1117_v42  ;;  %v1119_v17 = vpop.xlane.xlu0 %1118 }
 0x628   :  { %1236 = vst [vmem:[%s2359_s10 + $0x30] sm:$0xff] %v1220_v53  ;;  %v1221_v50 = vadd.f32 %v2252_v8, %v1199_v16  ;;  %v1196_v0 = vmul.f32 %v2246_v13, %v1174_v56  ;;  %v1175_v58 = vmul.f32 %v1559_v60, %v2177_v34  ;;  %1568 = vrsqrt.f32 %v1150_v62 }
 0x629   :  { %v1561_v28 = vpop.eup %1560  ;;  %v1151_v25 = vadd.f32 1e-05, %v1135_v26  ;;  %v1136_v54 = vmul.f32 0.03125, %v1119_v17  ;;  %v1121_v4 = vpop.xlane.xlu1 %1120 }
 0x62a   :  { %1237 = vst [vmem:[%s2359_s10 + $0x38] sm:$0xff] %v1221_v50  ;;  %v1218_v9 = vadd.f32 %v2252_v8, %v1196_v0  ;;  %v1197_v24 = vmul.f32 %v2246_v13, %v1175_v58  ;;  %v1180_v30 = vmul.f32 %v1561_v28, %v2185_v33  ;;  %v1137_v41 = vmul.f32 0.03125, %v1121_v4 }
 0x62b   :  { %v1563_v38 = vpop.eup %1562  ;;  %1570 = vrsqrt.f32 %v1151_v25  ;;  %v1152_v55 = vadd.f32 1e-05, %v1136_v54 }
 0x62c   :  { %1234 = vst [vmem:[%s2359_s10 + $0x20] sm:$0xff] %v1218_v9  ;;  %v1219_v34 = vadd.f32 %v2252_v8, %v1197_v24  ;;  %v1202_v36 = vmul.f32 %v2246_v13, %v1180_v30  ;;  %v1181_v39 = vmul.f32 %v1563_v38, %v2193_v44  ;;  %v1153_v57 = vadd.f32 1e-05, %v1137_v41 }
 0x62d   :  { %v1565_v35 = vpop.eup %1564  ;;  %1572 = vrsqrt.f32 %v1152_v55 }
 0x62e   :  { %1235 = vst [vmem:[%s2359_s10 + $0x28] sm:$0xff] %v1219_v34  ;;  %v1224_v33 = vadd.f32 %v2252_v8, %v1202_v36  ;;  %v1203_v45 = vmul.f32 %v2246_v13, %v1181_v39  ;;  %v1178_v29 = vmul.f32 %v1565_v35, %v2201_v61  ;;  %1574 = vrsqrt.f32 %v1153_v57 }
 0x62f   :  { %v1567_v32 = vpop.eup %1566 }
 0x630   :  { %1240 = vst [vmem:[%s2359_s10 + $0x50] sm:$0xff] %v1224_v33  ;;  %v1225_v44 = vadd.f32 %v2252_v8, %v1203_v45  ;;  %v1200_v6 = vmul.f32 %v2246_v13, %v1178_v29  ;;  %v1179_v2 = vmul.f32 %v1567_v32, %v2207_v43 }
 0x632   :  { %v1569_v7 = vpop.eup %1568  ;;  %1241 = vst [vmem:[%s2359_s10 + $0x58] sm:$0xff] %v1225_v44  ;;  %v1222_v46 = vadd.f32 %v2252_v8, %v1200_v6  ;;  %v1201_v61 = vmul.f32 %v2246_v13, %v1179_v2 }
 0x633   :  { %v1182_v51 = vmul.f32 %v1569_v7, %v2217_v1 }
 0x634   :  { %1238 = vst [vmem:[%s2359_s10 + $0x40] sm:$0xff] %v1222_v46  ;;  %v1223_v59 = vadd.f32 %v2252_v8, %v1201_v61 }
 0x635   :  { %v1571_v31 = vpop.eup %1570  ;;  %v1204_v43 = vmul.f32 %v2246_v13, %v1182_v51 }
 0x636   :  { %1239 = vst [vmem:[%s2359_s10 + $0x48] sm:$0xff] %v1223_v59  ;;  %v1183_v5 = vmul.f32 %v1571_v31, %v2225_v15 }
 0x637   :  { %v1573_v14 = vpop.eup %1572  ;;  %v1226_v63 = vadd.f32 %v2252_v8, %v1204_v43 }
 0x638   :  { %v1575_v37 = vpop.eup %1574  ;;  %v1205_v1 = vmul.f32 %v2246_v13, %v1183_v5  ;;  %v1184_v27 = vmul.f32 %v1573_v14, %v2233_v18 }
 0x639   :  { %1242 = vst [vmem:[%s2359_s10 + $0x60] sm:$0xff] %v1226_v63  ;;  %v1185_v19 = vmul.f32 %v1575_v37, %v2239_v3 }
 0x63a   :  { %v1227_v47 = vadd.f32 %v2252_v8, %v1205_v1  ;;  %v1206_v20 = vmul.f32 %v2246_v13, %v1184_v27 }
 0x63b   :  { %v1207_v15 = vmul.f32 %v2246_v13, %v1185_v19 }
 0x63c   :  { %1243 = vst [vmem:[%s2359_s10 + $0x68] sm:$0xff] %v1227_v47  ;;  %v1228_v40 = vadd.f32 %v2252_v8, %v1206_v20 }
 0x63d   :  { %v1229_v18 = vadd.f32 %v2252_v8, %v1207_v15 }
 0x63e   :  { %1244 = vst [vmem:[%s2359_s10 + $0x70] sm:$0xff] %v1228_v40 }
 0x63f   :  { %1245 = vst [vmem:[%s2359_s10 + $0x78] sm:$0xff] %v1229_v18 }

</bundles_post_ra>
